<compile_context>
chip_gen: v5e
topology: v5e:2x2
jax: 0.10.0
libtpu: 0.0.40
codegen_flags: <defaults>
</compile_context>

<pallas_src>
import functools

import jax
import jax.numpy as jnp
from jax.experimental import pallas as pl
from jax.experimental.pallas import tpu as pltpu


def _round_up(a, m):
    return (a + m - 1) // m * m


# ------------------------------ fused kernel --------------------------------
def _conv2d_block_kernel(col_ref, w1_ref, b1_ref, w2_ref, b2_ref, o_ref):
    """One (batch, row-tile) block per grid step.

    col_ref: (1, 4, TM, 9*Cin)   per-tap im2col of the padded input (bf16)
    w1_ref : (9*Cin, Cout)       conv1 weights, eval-BatchNorm folded in (bf16)
    b1_ref : (1, Cout)           folded conv1+BN bias (f32)
    w2_ref : (4*Cout, Cout)      conv2 (2x2, stride 2) weights, tap-major (bf16)
    b2_ref : (1, Cout)           conv2 bias (f32)
    o_ref  : (1, TM, Cout)       block output (bf16/f32, lane-dense)
    """
    w1 = w1_ref[...]                       # resident weights, loaded once
    b1 = b1_ref[...]                       # (1, Cout) f32, hoisted out of the tap loop
    ys = []
    for t in range(4):                     # 2x2 stride-2 taps == conv1 output phases
        # conv1 for this tap: ONE MXU matmul with K = 9*Cin, f32 accumulation.
        a1 = jnp.dot(col_ref[0, t], w1, preferred_element_type=jnp.float32) + b1
        # SiLU = y * sigmoid(y); sigmoid via EUP exp + approx reciprocal
        # (keeps the divide off the VPU).  Clamp keeps exp(-y) finite.
        e = jnp.exp(-jnp.maximum(a1, -30.0))
        y = a1 * pl.reciprocal(1.0 + e, approx=True)
        ys.append(y.astype(w2_ref.dtype))
    # conv2 (2x2, stride 2) as ONE K=4*Cout matmul on the lane-concatenated taps.
    ycat = jnp.concatenate(ys, axis=-1)    # (TM, 4*Cout) bf16, 128-aligned pieces
    z = jnp.dot(ycat, w2_ref[...], preferred_element_type=jnp.float32) + b2_ref[...]
    # TODO(synk): Dropout(0.1) is evaluated in inference mode (identity).
    o_ref[0] = z.astype(o_ref.dtype)


# ------------------------------ host wrapper ---------------------------------
@functools.partial(
    jax.jit,
    static_argnames=("kernel_size", "stride", "padding", "row_tile", "out_dtype", "nchw_out"),
)
def conv2d_block_forward(params, x, *, kernel_size=3, stride=1, padding=1,
                         row_tile=None, out_dtype=jnp.bfloat16, nchw_out=False):
    """x: (B, Cin, H, W) float32 (PyTorch NCHW).

    Returns (B, Ho, Wo, Cout) in `out_dtype` (NHWC, bf16 by default — the
    cheapest layout/dtype for the downstream consumer); set nchw_out=True /
    out_dtype=jnp.float32 for exact PyTorch layout & dtype.
    """
    if stride != 1:
        # TODO(synk): non-default first-conv stride (!=1) not implemented.
        raise NotImplementedError("Pallas Conv2dBlock assumes the default stride=1 first conv")
    k, p = kernel_size, padding
    B, Cin, H, W = x.shape
    Cout = params["b1"].shape[-1]
    kkc = k * k * Cin
    H1, W1 = H + 2 * p - k + 1, W + 2 * p - k + 1      # conv1 output size
    Ho, Wo = H1 // 2, W1 // 2                          # conv2 (2x2, s=2) output size
    M = Ho * Wo

    # NCHW -> NHWC (channels minor), bf16 for the MXU, zero pad.
    xh = jnp.transpose(x, (0, 2, 3, 1)).astype(jnp.bfloat16)
    xpad = jnp.pad(xh, ((0, 0), (p, p), (p, p), (0, 0)))

    # Host-side per-tap im2col:
    #   col[b, dy*2+dx, i*Wo+j, (ky*k+kx)*Cin+c] = xpad[b, 2i+dy+ky, 2j+dx+kx, c]
    # Each conv2 tap (dy,dx) consumes exactly one conv1-output phase, so row
    # tiles of `col` need no halo and conv1 collapses to one K=kkc matmul/tap.
    taps = []
    for dy in range(2):
        for dx in range(2):
            win = []
            for ky in range(k):
                for kx in range(k):
                    ys, xs = dy + ky, dx + kx
                    win.append(xpad[:, ys:ys + 2 * Ho - 1:2, xs:xs + 2 * Wo - 1:2, :])
            taps.append(jnp.concatenate(win, axis=-1))          # (B, Ho, Wo, kkc)
    col = jnp.stack(taps, axis=1).reshape(B, 4, M, kkc)         # (B, 4, M, kkc)

    # Row (M) tiling: biggest tile that keeps the per-step footprint far below
    # v7x's 64 MiB VMEM (≈5.6 KB live per row incl. double buffers).
    if row_tile is None:
        tm = min(4096, _round_up(M, 16))
    else:
        tm = _round_up(row_tile, 16)
    Mp = _round_up(M, tm)
    if Mp != M:
        col = jnp.pad(col, ((0, 0), (0, 0), (0, Mp - M), (0, 0)))
    n_row_tiles = Mp // tm

    out_flat = pl.pallas_call(
        _conv2d_block_kernel,
        grid=(B, n_row_tiles),
        in_specs=[
            pl.BlockSpec((1, 4, tm, kkc), lambda b, r: (b, 0, r, 0)),
            pl.BlockSpec((kkc, Cout), lambda b, r: (0, 0)),          # resident weights
            pl.BlockSpec((1, Cout), lambda b, r: (0, 0)),
            pl.BlockSpec((4 * Cout, Cout), lambda b, r: (0, 0)),     # resident weights
            pl.BlockSpec((1, Cout), lambda b, r: (0, 0)),
        ],
        out_specs=pl.BlockSpec((1, tm, Cout), lambda b, r: (b, r, 0)),
        out_shape=jax.ShapeDtypeStruct((B, Mp, Cout), out_dtype),
        compiler_params=pltpu.CompilerParams(
            dimension_semantics=("parallel", "parallel"),   # megacore-shards B and rows
            vmem_limit_bytes=64 * 1024 * 1024,
        ),
    )(col, params["w1"], params["b1"], params["w2"], params["b2"])

    out = out_flat[:, :M, :].reshape(B, Ho, Wo, Cout)       # NHWC (no extra relayout)
    if nchw_out:
        out = jnp.transpose(out, (0, 3, 1, 2))              # optional PyTorch NCHW
    return out


# ------------------------------ parameters -----------------------------------
def init_raw_params(key, in_channels, out_channels, kernel_size=3):
    """PyTorch-style raw parameters (Conv OIHW weights + BatchNorm stats)."""
    ks = jax.random.split(key, 8)
    n = lambda k_, shape, s: (s * jax.random.normal(k_, shape)).astype(jnp.float32)
    return {
        "conv1_w": n(ks[0], (out_channels, in_channels, kernel_size, kernel_size), 0.1),
        "conv1_b": n(ks[1], (out_channels,), 0.1),
        "bn_gamma": 1.0 + n(ks[2], (out_channels,), 0.1),
        "bn_beta": n(ks[3], (out_channels,), 0.1),
        "bn_mean": n(ks[4], (out_channels,), 0.1),
        "bn_var": 1.0 + jnp.abs(n(ks[5], (out_channels,), 0.1)),
        "conv2_w": n(ks[6], (out_channels, out_channels, 2, 2), 0.05),
        "conv2_b": n(ks[7], (out_channels,), 0.1),
    }


def pack_params(raw, eps=1e-5):
    """Fold eval-mode BatchNorm into conv1 and flatten PyTorch OIHW weights into
    the matmul layouts the kernel consumes (bf16 for MXU):
      w1: (k*k*Cin, Cout)  row = (ky*k+kx)*Cin + c   (matches im2col order)
      w2: (4*Cout, Cout)   row = (dy*2+dx)*Cout + c  (matches tap-concat order)
    """
    cout, cin, k, _ = raw["conv1_w"].shape
    scale = raw["bn_gamma"] / jnp.sqrt(raw["bn_var"] + eps)
    w1 = raw["conv1_w"] * scale[:, None, None, None]
    b1 = (raw["conv1_b"] - raw["bn_mean"]) * scale + raw["bn_beta"]
    w1 = jnp.transpose(w1, (2, 3, 1, 0)).reshape(k * k * cin, cout)
    w2 = jnp.transpose(raw["conv2_w"], (2, 3, 1, 0)).reshape(4 * cout, cout)
    return {
        "w1": w1.astype(jnp.bfloat16),
        "b1": b1.reshape(1, cout).astype(jnp.float32),
        "w2": w2.astype(jnp.bfloat16),
        "b2": raw["conv2_b"].reshape(1, cout).astype(jnp.float32),
    }


# --------------------------- pure-JAX reference -------------------------------
def reference_forward(raw, x, kernel_size=3, padding=1, eps=1e-5):
    dn = ("NCHW", "OIHW", "NCHW")
    hp = jax.lax.Precision.HIGHEST
    y = jax.lax.conv_general_dilated(
        x, raw["conv1_w"], (1, 1), [(padding, padding), (padding, padding)],
        dimension_numbers=dn, precision=hp)
    y = y + raw["conv1_b"][None, :, None, None]
    scale = (raw["bn_gamma"] / jnp.sqrt(raw["bn_var"] + eps))[None, :, None, None]
    y = (y - raw["bn_mean"][None, :, None, None]) * scale + raw["bn_beta"][None, :, None, None]
    y = y * jax.nn.sigmoid(y)
    z = jax.lax.conv_general_dilated(
        y, raw["conv2_w"], (2, 2), [(0, 0), (0, 0)], dimension_numbers=dn, precision=hp)
    return z + raw["conv2_b"][None, :, None, None]


# ----------------------------------- main -------------------------------------
if __name__ == "__main__":
    key = jax.random.PRNGKey(0)
    pkey, xkey = jax.random.split(key)

    B, IN_C, OUT_C, H, W = 2, 4, 128, 16, 16   # small shapes; Cout=128 keeps stores lane-dense
    Ho, Wo = H // 2, W // 2

    raw = init_raw_params(pkey, IN_C, OUT_C, kernel_size=3)
    params = pack_params(raw)
    x = jax.random.normal(xkey, (B, IN_C, H, W), jnp.float32)

    # Default fast path: bf16 NHWC output, multiple row tiles per image (grid=(2,2)).
    out_bf16 = conv2d_block_forward(params, x, row_tile=32)
    out_bf16 = jax.block_until_ready(out_bf16)
    assert out_bf16.shape == (B, Ho, Wo, OUT_C), out_bf16.shape
    assert out_bf16.dtype == jnp.bfloat16
    assert bool(jnp.all(jnp.isfinite(out_bf16.astype(jnp.float32))))

    # f32 / NCHW path for the numerical check against the pure-JAX reference.
    out_f32 = conv2d_block_forward(params, x, row_tile=32,
                                   out_dtype=jnp.float32, nchw_out=True)
    out_f32 = jax.block_until_ready(out_f32)
    ref = reference_forward(raw, x, kernel_size=3, padding=1)
    err = float(jnp.max(jnp.abs(out_f32 - ref)))
    assert err < 5e-2, f"max abs error vs reference: {err}"

    # bf16 output path only differs from the f32 path by the final rounding.
    out_bf16_nchw = jnp.transpose(out_bf16.astype(jnp.float32), (0, 3, 1, 2))
    round_err = float(jnp.max(jnp.abs(out_bf16_nchw - out_f32)))
    round_tol = 0.004 * float(jnp.max(jnp.abs(out_f32))) + 1e-3
    assert round_err <= round_tol, f"bf16 output rounding {round_err} > {round_tol}"

    print("KERNEL_OK")
</pallas_src>

<mosaic_0001>
module attributes {stable_mosaic.version = 11 : i64} {
  func.func @_conv2d_block_kernel(%arg0: i32, %arg1: i32, %arg2: memref<1x4x32x36xbf16, #tpu.memory_space<vmem>>, %arg3: memref<36x128xbf16, #tpu.memory_space<vmem>>, %arg4: memref<1x128xf32, #tpu.memory_space<vmem>>, %arg5: memref<512x128xbf16, #tpu.memory_space<vmem>>, %arg6: memref<1x128xf32, #tpu.memory_space<vmem>>, %arg7: memref<1x32x128xbf16, #tpu.memory_space<vmem>>) attributes {dimension_semantics = [#tpu.dimension_semantics<parallel>, #tpu.dimension_semantics<parallel>], iteration_bounds = array<i64: 2, 2>, scalar_prefetch = 0 : i64, scratch_operands = 0 : i64, tpu.core_type = #tpu.core_type<tc>, window_params = [{transform_indices = @transform_0, window_bounds = array<i64: 1, 4, 32, 36>}, {pipeline_mode = #tpu.pipeline_mode<synchronous>, transform_indices = @transform_1, window_bounds = array<i64: 36, 128>}, {pipeline_mode = #tpu.pipeline_mode<synchronous>, transform_indices = @transform_2, window_bounds = array<i64: 1, 128>}, {pipeline_mode = #tpu.pipeline_mode<synchronous>, transform_indices = @transform_3, window_bounds = array<i64: 512, 128>}, {pipeline_mode = #tpu.pipeline_mode<synchronous>, transform_indices = @transform_4, window_bounds = array<i64: 1, 128>}, {transform_indices = @transform_5, window_bounds = array<i64: 1, 32, 128>}]} {
    %c0 = arith.constant 0 : index
    %c0_0 = arith.constant 0 : index
    %0 = vector.load %arg3[%c0, %c0_0] : memref<36x128xbf16, #tpu.memory_space<vmem>>, vector<36x128xbf16>
    %c0_1 = arith.constant 0 : index
    %c0_2 = arith.constant 0 : index
    %1 = vector.load %arg4[%c0_1, %c0_2] : memref<1x128xf32, #tpu.memory_space<vmem>>, vector<1x128xf32>
    %c0_3 = arith.constant 0 : index
    %c0_4 = arith.constant 0 : index
    %c0_5 = arith.constant 0 : index
    %c0_6 = arith.constant 0 : index
    %2 = vector.load %arg2[%c0_3, %c0_4, %c0_5, %c0_6] : memref<1x4x32x36xbf16, #tpu.memory_space<vmem>>, vector<1x1x32x36xbf16>
    %3 = vector.shape_cast %2 : vector<1x1x32x36xbf16> to vector<32x36xbf16>
    %cst = arith.constant dense<0.000000e+00> : vector<32x128xf32>
    %4 = tpu.matmul %3, %0, %cst {dimension_numbers = #tpu.dot_dimension_numbers<[1], [0], [0], [1], [0, 0, 1, 1], [], []>} : vector<32x36xbf16>, vector<36x128xbf16>, vector<32x128xf32> -> vector<32x128xf32>
    %5 = vector.broadcast %1 : vector<1x128xf32> to vector<32x128xf32>
    %6 = arith.addf %4, %5 : vector<32x128xf32>
    %cst_7 = arith.constant -3.000000e+01 : f32
    %7 = vector.broadcast %cst_7 : f32 to vector<32x128xf32>
    %8 = arith.maximumf %6, %7 : vector<32x128xf32>
    %cst_8 = arith.constant 0.000000e+00 : f32
    %9 = vector.broadcast %cst_8 : f32 to vector<32x128xf32>
    %10 = arith.subf %9, %8 : vector<32x128xf32>
    %11 = math.exp %10 : vector<32x128xf32>
    %cst_9 = arith.constant 1.000000e+00 : f32
    %12 = vector.broadcast %cst_9 : f32 to vector<32x128xf32>
    %13 = arith.addf %12, %11 : vector<32x128xf32>
    %14 = tpu.reciprocal %13 {approx = true} : vector<32x128xf32> -> vector<32x128xf32>
    %15 = arith.mulf %6, %14 : vector<32x128xf32>
    %16 = arith.truncf %15 : vector<32x128xf32> to vector<32x128xbf16>
    %c0_10 = arith.constant 0 : index
    %c1 = arith.constant 1 : index
    %c0_11 = arith.constant 0 : index
    %c0_12 = arith.constant 0 : index
    %17 = vector.load %arg2[%c0_10, %c1, %c0_11, %c0_12] : memref<1x4x32x36xbf16, #tpu.memory_space<vmem>>, vector<1x1x32x36xbf16>
    %18 = vector.shape_cast %17 : vector<1x1x32x36xbf16> to vector<32x36xbf16>
    %cst_13 = arith.constant dense<0.000000e+00> : vector<32x128xf32>
    %19 = tpu.matmul %18, %0, %cst_13 {dimension_numbers = #tpu.dot_dimension_numbers<[1], [0], [0], [1], [0, 0, 1, 1], [], []>} : vector<32x36xbf16>, vector<36x128xbf16>, vector<32x128xf32> -> vector<32x128xf32>
    %20 = vector.broadcast %1 : vector<1x128xf32> to vector<32x128xf32>
    %21 = arith.addf %19, %20 : vector<32x128xf32>
    %cst_14 = arith.constant -3.000000e+01 : f32
    %22 = vector.broadcast %cst_14 : f32 to vector<32x128xf32>
    %23 = arith.maximumf %21, %22 : vector<32x128xf32>
    %cst_15 = arith.constant 0.000000e+00 : f32
    %24 = vector.broadcast %cst_15 : f32 to vector<32x128xf32>
    %25 = arith.subf %24, %23 : vector<32x128xf32>
    %26 = math.exp %25 : vector<32x128xf32>
    %cst_16 = arith.constant 1.000000e+00 : f32
    %27 = vector.broadcast %cst_16 : f32 to vector<32x128xf32>
    %28 = arith.addf %27, %26 : vector<32x128xf32>
    %29 = tpu.reciprocal %28 {approx = true} : vector<32x128xf32> -> vector<32x128xf32>
    %30 = arith.mulf %21, %29 : vector<32x128xf32>
    %31 = arith.truncf %30 : vector<32x128xf32> to vector<32x128xbf16>
    %c0_17 = arith.constant 0 : index
    %c2 = arith.constant 2 : index
    %c0_18 = arith.constant 0 : index
    %c0_19 = arith.constant 0 : index
    %32 = vector.load %arg2[%c0_17, %c2, %c0_18, %c0_19] : memref<1x4x32x36xbf16, #tpu.memory_space<vmem>>, vector<1x1x32x36xbf16>
    %33 = vector.shape_cast %32 : vector<1x1x32x36xbf16> to vector<32x36xbf16>
    %cst_20 = arith.constant dense<0.000000e+00> : vector<32x128xf32>
    %34 = tpu.matmul %33, %0, %cst_20 {dimension_numbers = #tpu.dot_dimension_numbers<[1], [0], [0], [1], [0, 0, 1, 1], [], []>} : vector<32x36xbf16>, vector<36x128xbf16>, vector<32x128xf32> -> vector<32x128xf32>
    %35 = vector.broadcast %1 : vector<1x128xf32> to vector<32x128xf32>
    %36 = arith.addf %34, %35 : vector<32x128xf32>
    %cst_21 = arith.constant -3.000000e+01 : f32
    %37 = vector.broadcast %cst_21 : f32 to vector<32x128xf32>
    %38 = arith.maximumf %36, %37 : vector<32x128xf32>
    %cst_22 = arith.constant 0.000000e+00 : f32
    %39 = vector.broadcast %cst_22 : f32 to vector<32x128xf32>
    %40 = arith.subf %39, %38 : vector<32x128xf32>
    %41 = math.exp %40 : vector<32x128xf32>
    %cst_23 = arith.constant 1.000000e+00 : f32
    %42 = vector.broadcast %cst_23 : f32 to vector<32x128xf32>
    %43 = arith.addf %42, %41 : vector<32x128xf32>
    %44 = tpu.reciprocal %43 {approx = true} : vector<32x128xf32> -> vector<32x128xf32>
    %45 = arith.mulf %36, %44 : vector<32x128xf32>
    %46 = arith.truncf %45 : vector<32x128xf32> to vector<32x128xbf16>
    %c0_24 = arith.constant 0 : index
    %c3 = arith.constant 3 : index
    %c0_25 = arith.constant 0 : index
    %c0_26 = arith.constant 0 : index
    %47 = vector.load %arg2[%c0_24, %c3, %c0_25, %c0_26] : memref<1x4x32x36xbf16, #tpu.memory_space<vmem>>, vector<1x1x32x36xbf16>
    %48 = vector.shape_cast %47 : vector<1x1x32x36xbf16> to vector<32x36xbf16>
    %cst_27 = arith.constant dense<0.000000e+00> : vector<32x128xf32>
    %49 = tpu.matmul %48, %0, %cst_27 {dimension_numbers = #tpu.dot_dimension_numbers<[1], [0], [0], [1], [0, 0, 1, 1], [], []>} : vector<32x36xbf16>, vector<36x128xbf16>, vector<32x128xf32> -> vector<32x128xf32>
    %50 = vector.broadcast %1 : vector<1x128xf32> to vector<32x128xf32>
    %51 = arith.addf %49, %50 : vector<32x128xf32>
    %cst_28 = arith.constant -3.000000e+01 : f32
    %52 = vector.broadcast %cst_28 : f32 to vector<32x128xf32>
    %53 = arith.maximumf %51, %52 : vector<32x128xf32>
    %cst_29 = arith.constant 0.000000e+00 : f32
    %54 = vector.broadcast %cst_29 : f32 to vector<32x128xf32>
    %55 = arith.subf %54, %53 : vector<32x128xf32>
    %56 = math.exp %55 : vector<32x128xf32>
    %cst_30 = arith.constant 1.000000e+00 : f32
    %57 = vector.broadcast %cst_30 : f32 to vector<32x128xf32>
    %58 = arith.addf %57, %56 : vector<32x128xf32>
    %59 = tpu.reciprocal %58 {approx = true} : vector<32x128xf32> -> vector<32x128xf32>
    %60 = arith.mulf %51, %59 : vector<32x128xf32>
    %61 = arith.truncf %60 : vector<32x128xf32> to vector<32x128xbf16>
    %62 = tpu.concatenate %16, %31, %46, %61 in 1 : vector<32x128xbf16>, vector<32x128xbf16>, vector<32x128xbf16>, vector<32x128xbf16> -> vector<32x512xbf16>
    %c0_31 = arith.constant 0 : index
    %c0_32 = arith.constant 0 : index
    %63 = vector.load %arg5[%c0_31, %c0_32] : memref<512x128xbf16, #tpu.memory_space<vmem>>, vector<512x128xbf16>
    %cst_33 = arith.constant dense<0.000000e+00> : vector<32x128xf32>
    %64 = tpu.matmul %62, %63, %cst_33 {dimension_numbers = #tpu.dot_dimension_numbers<[1], [0], [0], [1], [0, 0, 1, 1], [], []>} : vector<32x512xbf16>, vector<512x128xbf16>, vector<32x128xf32> -> vector<32x128xf32>
    %c0_34 = arith.constant 0 : index
    %c0_35 = arith.constant 0 : index
    %65 = vector.load %arg6[%c0_34, %c0_35] : memref<1x128xf32, #tpu.memory_space<vmem>>, vector<1x128xf32>
    %66 = vector.broadcast %65 : vector<1x128xf32> to vector<32x128xf32>
    %67 = arith.addf %64, %66 : vector<32x128xf32>
    %68 = arith.truncf %67 : vector<32x128xf32> to vector<32x128xbf16>
    %c0_36 = arith.constant 0 : index
    %c0_37 = arith.constant 0 : index
    %c0_38 = arith.constant 0 : index
    %69 = vector.load %arg7[%c0_36, %c0_37, %c0_38] : memref<1x32x128xbf16, #tpu.memory_space<vmem>>, vector<1x32x128xbf16>
    %70 = vector.shape_cast %69 : vector<1x32x128xbf16> to vector<32x128xbf16>
    %71 = vector.shape_cast %68 : vector<32x128xbf16> to vector<1x32x128xbf16>
    tpu.vector_store %arg7[%c0_36, %c0_37, %c0_38], %71 {strides = array<i32>} : memref<1x32x128xbf16, #tpu.memory_space<vmem>>, vector<1x32x128xbf16>,
    return
  }
  func.func @transform_0(%arg0: i32, %arg1: i32) -> (i32, i32, i32, i32) {
    %c0_i32 = arith.constant 0 : i32
    %c0_i32_0 = arith.constant 0 : i32
    %c0_i32_1 = arith.constant 0 : i32
    return %arg0, %c0_i32, %arg1, %c0_i32_0 : i32, i32, i32, i32
  }
  func.func @transform_1(%arg0: i32, %arg1: i32) -> (i32, i32) {
    %c0_i32 = arith.constant 0 : i32
    %c0_i32_0 = arith.constant 0 : i32
    %c0_i32_1 = arith.constant 0 : i32
    return %c0_i32, %c0_i32_0 : i32, i32
  }
  func.func @transform_2(%arg0: i32, %arg1: i32) -> (i32, i32) {
    %c0_i32 = arith.constant 0 : i32
    %c0_i32_0 = arith.constant 0 : i32
    %c0_i32_1 = arith.constant 0 : i32
    return %c0_i32, %c0_i32_0 : i32, i32
  }
  func.func @transform_3(%arg0: i32, %arg1: i32) -> (i32, i32) {
    %c0_i32 = arith.constant 0 : i32
    %c0_i32_0 = arith.constant 0 : i32
    %c0_i32_1 = arith.constant 0 : i32
    return %c0_i32, %c0_i32_0 : i32, i32
  }
  func.func @transform_4(%arg0: i32, %arg1: i32) -> (i32, i32) {
    %c0_i32 = arith.constant 0 : i32
    %c0_i32_0 = arith.constant 0 : i32
    %c0_i32_1 = arith.constant 0 : i32
    return %c0_i32, %c0_i32_0 : i32, i32
  }
  func.func @transform_5(%arg0: i32, %arg1: i32) -> (i32, i32, i32) {
    %c0_i32 = arith.constant 0 : i32
    %c0_i32_0 = arith.constant 0 : i32
    return %arg0, %arg1, %c0_i32 : i32, i32, i32
  }
}

</mosaic_0001>

<bundles_post_ra>
// kernel: conv2d_block_forward.1
= control target key start
LH: loop header
LB: loop body
LE: loop exit
PB: predicated region body
PF: predicated region fallthrough
CT: control target
= control target key end

     0   :  { %10 = vsyncpa [#allocation4], 0  ;;  %s2019_s0 = inlined_call_operand.vmem [shape: bf16[2,4,64,36], index: 0, kind: input, shape index: {}]   ;;  %s2020_s1 = inlined_call_operand.vmem [shape: bf16[36,128], index: 1, kind: input, shape index: {}]   ;;  %s2021_s2 = inlined_call_operand.vmem [shape: f32[1,128], index: 2, kind: input, shape index: {}]   ;;  %s2022_s3 = inlined_call_operand.vmem [shape: bf16[512,128], index: 3, kind: input, shape index: {}]   ;;  %s2023_s4 = inlined_call_operand.vmem [shape: f32[1,128], index: 4, kind: input, shape index: {}]   ;;  %s2024_s5 = inlined_call_operand.hbm [shape: bf16[2,64,128], index: 5, kind: output, shape index: {}]  }
   0x1   :  { %12 = vsyncpa [#allocation4 + $0x1], 0  ;;  %s1684_s18 = smov 0   ;;  %s1686_s19 = smov 0  }
   0x2   :  { %s1688_s20 = smov 0   ;;  %s1690_s21 = smov 0  }
   0x3   :  { %s1692_s22 = smov 0   ;;  %s1694_s23 = smov 0  }
   0x4   :  { %s1696_s24 = smov 0   ;;  %s1698_s25 = smov 0  }
   0x5 LB: > { %s1159_s26 = sadd.s32 4294967295, %s1650_s25   ;;  %s1160_s27 = sadd.s32 4294967294, %s1650_s25   ;;  %s1650_s25 = sphi %s1698_s25, %s18_s25   ;;  %s1646_s24 = sphi %s1696_s24, %s2034_s24   ;;  %s1642_s23 = sphi %s1694_s23, %s2033_s23   ;;  %s1638_s22 = sphi %s1692_s22, %s2032_s22   ;;  %s1634_s21 = sphi %s1690_s21, %s2031_s21   ;;  %s1630_s20 = sphi %s1688_s20, %s2030_s20   ;;  %s1626_s19 = sphi %s1686_s19, %s2029_s19   ;;  %s1622_s18 = sphi %s1684_s18, %s2028_s18  }
   0x6   : > { %s27_s28 = sadd.s32 1, %s1642_s23  ;;  %s30_s29 = sadd.s32 1, %s1646_s24 }
   0x7   : > { %p28_p0 = scmp.ge.s32.totalorder %s27_s28, 2  ;;  %p46_p1 = scmp.ne.s32.totalorder %s1630_s20, %s1626_s19 }
   0x8   : > { %p47_p2 = scmp.eq.s32.totalorder %s1650_s25, 0  ;;  %p162_p5 = scmp.eq.s32.totalorder %s1159_s26, 3 }
   0x9   : > { %s2036_s28 = smov (%p28_p0, %s27_s28), 0  ;;  %s2038_s29 = smov (!%p28_p0, %s30_s29), %s1646_s24 }
   0xa   : > { %s35_s30 = ssub.s32 %s1642_s23, %s2036_s28  ;;  %p1736_p3 = por %p47_p2, %p46_p1 }
   0xb   : > { %p32_p4 = scmp.ge.s32.totalorder %s2038_s29, 2  ;;  %p167_p6 = scmp.ne.s32.totalorder %s1626_s19, %s1622_s18 }
   0xc   : > { %p168_p7 = scmp.eq.s32.totalorder %s1160_s27, 3  ;;  %p1744_p8 = por %p162_p5, %p46_p1 }
   0xd   : > { %s2040_s29 = smov (%p32_p4, %s2038_s29), 0  ;;  %s39_s11 = sadd.s32 1, %s1630_s20 }
   0xe   : > { %p1748_p9 = por %p168_p7, %p167_p6  ;;  %s34_s9 = ssub.s32 %s1646_s24, %s2040_s29 }
   0xf   : > { %s36_s10 = sor.u32 %s35_s30, %s34_s9  ;;  %p1162_p11 = scmp.ge.s32.totalorder %s1650_s25, 4 }
  0x10   : > { %p37_p10 = scmp.eq.s32.totalorder %s36_s10, 0 }
  0x11   : > { %196 = sbr.rel (%p1162_p11) target bundleno = 37 (0x25), region = 32 }
  0x12   : > { %s1756_s12 = scalar_select %p37_p10, %s1630_s20, %s39_s11  }
  0x16   : > { %199 = sbr.rel (!%p1736_p3) target bundleno = 37 (0x25), region = 36  ;;  %s201_s13 = sand.u32 (%p1736_p3), 1, %s1630_s20  }
  0x17   : > { %s1164_s14 = sshll.u32 (%p1736_p3), %s1642_s23, 2  ;;  %s1163_s15 = sshll.u32 (%p1736_p3), %s201_s13, 6 }
  0x18   : > { %s1165_s16 = sshll.u32 (%p1736_p3), %s1646_s24, 5  ;;  %s203_s10 = scalar_lea.vmem (%p1736_p3), [#allocation2], %s1163_s15 }
  0x19   : > { %s206_s17 = sadd.s32 (%p1736_p3), %s1165_s16, %s1164_s14 }
  0x1a   : > { %s1166_s26 = sshll.u32 (%p1736_p3), %s206_s17, 2 }
  0x1b   : > { %s208_s9 = scalar_lea.vmem %s2019_s0, %s1166_s26 }
  0x1c   : > { %v225_v0 = vld [vmem:[%s208_s9] sm:$0xff]   ;;  %v229_v1 = vld [vmem:[%s208_s9 + $0x8] sm:$0xff]  }
  0x1d   : > { %v233_v2 = vld [vmem:[%s208_s9 + $0x20] sm:$0xff]   ;;  %226 = vst [vmem:[%s203_s10] sm:$0xff] %v225_v0   ;;  %v237_v3 = vld [vmem:[%s208_s9 + $0x28] sm:$0xff]  }
  0x1e   : > { %230 = vst [vmem:[%s203_s10 + $0x8] sm:$0xff] %v229_v1   ;;  %v241_v4 = vld [vmem:[%s208_s9 + $0x40] sm:$0xff]   ;;  %v245_v5 = vld [vmem:[%s208_s9 + $0x48] sm:$0xff]  }
  0x1f   : > { %234 = vst [vmem:[%s203_s10 + $0x10] sm:$0xff] %v233_v2   ;;  %v249_v6 = vld [vmem:[%s208_s9 + $0x60] sm:$0xff]   ;;  %v253_v7 = vld [vmem:[%s208_s9 + $0x68] sm:$0xff]  }
  0x20   : > { %238 = vst [vmem:[%s203_s10 + $0x18] sm:$0xff] %v237_v3  }
  0x21   : > { %242 = vst [vmem:[%s203_s10 + $0x20] sm:$0xff] %v241_v4  }
  0x22   : > { %246 = vst [vmem:[%s203_s10 + $0x28] sm:$0xff] %v245_v5  }
  0x23   : > { %250 = vst [vmem:[%s203_s10 + $0x30] sm:$0xff] %v249_v6  }
  0x24   : > { %254 = vst [vmem:[%s203_s10 + $0x38] sm:$0xff] %v253_v7  }
  0x25 PF: > { %p1167_p12 = scmp.ge.s32.totalorder %s1650_s25, 1  ;;  %p311_p13 = scmp.lt.s32.totalorder %s1650_s25, 5 }
  0x27   : > { %p312_p0 = pnand %p1167_p12, %p311_p13 }
  0x28   : > { %s1773_s13 = sand.u32 (!%p312_p0), 1, %s1626_s19   ;;  %s1359_s11 = sshll.u32 (!%p312_p0), %s1634_s21, 2 }
  0x29   : > { %315 = sbr.rel (%p312_p0) target bundleno = 405 (0x195), region = 77  ;;  %s1168_s16 = sshll.u32 (!%p312_p0), %s1773_s13, 6 }
  0x2a   : > { %s320_s27 = scalar_lea.vmem (!%p312_p0), [#allocation2], %s1168_s16  ;;  %s1169_s10 = sshll.u32 (!%p312_p0), %s1773_s13, 4 }
  0x2b   : > { %s344_s6 = scalar_lea.vmem (!%p312_p0), [#allocation3], %s1169_s10  ;;  %s1360_s14 = sshll.u32 (!%p312_p0), %s1638_s22, 3 }
  0x2c   : > { %s1068_s15 = sadd.s32 (!%p312_p0), %s1360_s14, %s1359_s11  ;;  %s1071_s21 = sshll.u32 (!%p312_p0), %s344_s6, 4  ;;  %s1072_s21 = int_to_ptr.vmem [resolvable:$true] %s1071_s21 }
  0x2d   : > { %s1361_s16 = sshll.u32 (!%p312_p0), %s1068_s15, 2  ;;  %s1057_s30 = scalar_lea.sflag (!%p312_p0), [#allocation4], %s1773_s13 }
  0x2e   : > { %v352_v8 = vld [vmem:[%s2020_s1 + $0x10] sm:$0x3]  ;;  %vm393_vm0 = vcmask 1041408   ;;  %v1365_v12 = vld [vmem:[%s2020_s1 + $0x8] sm:$0xff]  ;;  %v1364_v13 = vld [vmem:[%s2020_s1] sm:$0xff]  ;;  %vm386_vm1 = vcmask 293888  }
  0x2f   : > { %v380_v9 = vunpack.c.l.b16 %v352_v8  ;;  %v1366_v14 = vld [vmem:[%s320_s27] sm:$0xff]  ;;  %v1368_v15 = vld [vmem:[%s320_s27 + $0x10] sm:$0xff]  ;;  %v1367_v18 = vld [vmem:[%s320_s27 + $0x8] sm:$0xff]  ;;  %s1576_s15 = scalar_lea.hbm %s2024_s5, 64 }
  0x30   : > { %v1370_v16 = vld [vmem:[%s320_s27 + $0x20] sm:$0xff]  ;;  %v1372_v17 = vld [vmem:[%s320_s27 + $0x30] sm:$0xff]  ;;  %v1369_v19 = vld [vmem:[%s320_s27 + $0x18] sm:$0xff] }
  0x31   : > { %v383_v10 = vpack.c.b16 %v380_v9, %v380_v9  ;;  %v1371_v20 = vld [vmem:[%s320_s27 + $0x28] sm:$0xff]  ;;  %v1373_v21 = vld [vmem:[%s320_s27 + $0x38] sm:$0xff]  ;;  %v1380_v24 = vld [vmem:[%s2022_s3 + $0x30] sm:$0xff]  ;;  %s1070_s27 = scalar_lea.hbm %s2024_s5, %s1361_s16 }
  0x32   : > { %v1381_v22 = vld [vmem:[%s2022_s3 + $0x38] sm:$0xff]  ;;  %v1388_v25 = vld [vmem:[%s2022_s3 + $0x70] sm:$0xff]  ;;  %v1379_v28 = vld [vmem:[%s2022_s3 + $0x28] sm:$0xff]  ;;  %s1073_s22 = sshll.u32 %s1070_s27, 4  ;;  %s1074_s22 = int_to_ptr.hbm [resolvable:$true] %s1073_s22 }
  0x33   : > { %v395_v11 = vsel %vm393_vm0, %v383_v10, 0  ;;  %v1389_v23 = vld [vmem:[%s2022_s3 + $0x78] sm:$0xff]  ;;  %v1387_v29 = vld [vmem:[%s2022_s3 + $0x68] sm:$0xff]  ;;  %v1396_v30 = vld [vmem:[%s2022_s3 + $0xb0] sm:$0xff]  ;;  %s1570_s9 = sshra.s32 %s1074_s22, 4  ;;  %s1571_s9 = int_to_ptr.hbm [resolvable:$true] %s1570_s9 }
  0x34   : > { %402 = vmatpush.bf16.msra.mxu0 %v395_v11  ;;  %474 = vmatpush.bf16.msra.mxu1 %v395_v11  ;;  %v1397_v26 = vld [vmem:[%s2022_s3 + $0xb8] sm:$0xff]  ;;  %v1404_v31 = vld [vmem:[%s2022_s3 + $0xf0] sm:$0xff]  ;;  %v1378_v32 = vld [vmem:[%s2022_s3 + $0x20] sm:$0xff]  ;;  %s1572_s10 = scalar_lea.hbm %s1571_s9, 16  ;;  %p1577_p4 = scmp.lt.s32.totalorder %s1571_s9, %s2024_s5 }
  0x35   : > { %546 = vmatpush.bf16.msra.mxu2 %v395_v11  ;;  %618 = vmatpush.bf16.msra.mxu3 %v395_v11  ;;  %v1405_v27 = vld [vmem:[%s2022_s3 + $0xf8] sm:$0xff]  ;;  %v1386_v33 = vld [vmem:[%s2022_s3 + $0x60] sm:$0xff]  ;;  %v1395_v34 = vld [vmem:[%s2022_s3 + $0xa8] sm:$0xff]  ;;  %p1573_p1 = scmp.ne.s32.totalorder %s1571_s9, %s1572_s10  ;;  %p1578_p5 = scmp.lt.s32.totalorder %s1576_s15, %s1572_s10 }
  0x36   : > { %v1403_v35 = vld [vmem:[%s2022_s3 + $0xe8] sm:$0xff]  ;;  %v1835_v36 = vld [vmem:[%s2021_s2] ss:$0 sm:$0xff]  ;;  %v1377_v37 = vld [vmem:[%s2022_s3 + $0x18] sm:$0xff] }
  0x37   : > { %v1385_v38 = vld [vmem:[%s2022_s3 + $0x58] sm:$0xff]  ;;  %v1394_v41 = vld [vmem:[%s2022_s3 + $0xa0] sm:$0xff]  ;;  %v1376_v45 = vld [vmem:[%s2022_s3 + $0x10] sm:$0xff]  ;;  %p1574_p2 = pnand %p1573_p1, %p1744_p8  ;;  %p1579_p6 = por %p1578_p5, %p1577_p4 }
  0x38   : > { %403 = vmatpush.bf16.msra.mxu0 %v1365_v12  ;;  %475 = vmatpush.bf16.msra.mxu1 %v1365_v12  ;;  %v1402_v42 = vld [vmem:[%s2022_s3 + $0xe0] sm:$0xff]  ;;  %v1384_v46 = vld [vmem:[%s2022_s3 + $0x50] sm:$0xff]  ;;  %v1393_v49 = vld [vmem:[%s2022_s3 + $0x98] sm:$0xff] }
  0x39   : > { %547 = vmatpush.bf16.msra.mxu2 %v1365_v12  ;;  %619 = vmatpush.bf16.msra.mxu3 %v1365_v12  ;;  %v1401_v50 = vld [vmem:[%s2022_s3 + $0xd8] sm:$0xff]  ;;  %v1375_v53 = vld [vmem:[%s2022_s3 + $0x8] sm:$0xff]  ;;  %v1392_v63 = vld [vmem:[%s2022_s3 + $0x90] sm:$0xff]  ;;  %p1575_p3 = pneg %p1574_p2 }
  0x3a   : > { %v1383_v54 = vld [vmem:[%s2022_s3 + $0x48] sm:$0xff]  ;;  %v1400_v0 = vld [vmem:[%s2022_s3 + $0xd0] sm:$0xff]  ;;  %v1374_v5 = vld [vmem:[%s2022_s3] sm:$0xff] }
  0x3b   : > { %v1382_v6 = vld [vmem:[%s2022_s3 + $0x40] sm:$0xff]  ;;  %v1391_v11 = vld [vmem:[%s2022_s3 + $0x88] sm:$0xff]  ;;  %p1580_p7 = pnand %p1579_p6, %p1575_p3 }
  0x3c   : > { %404 = vmatpush.bf16.msra.mxu0 %v1364_v13  ;;  %476 = vmatpush.bf16.msra.mxu1 %v1364_v13  ;;  %v1399_v12 = vld [vmem:[%s2022_s3 + $0xc8] sm:$0xff] }
  0x3d   : > { %548 = vmatpush.bf16.msra.mxu2 %v1364_v13  ;;  %620 = vmatpush.bf16.msra.mxu3 %v1364_v13 }
  0x3f   : > { %1186 = vmatmul.msk.bf16.vlgmr.msra.gmra.mxu0 %vm386_vm1, %v1366_v14  ;;  %1200 = vmatmul.msk.bf16.vlgmr.msra.gmra.mxu1 %vm386_vm1, %v1368_v15 }
  0x40   : > { %1214 = vmatmul.msk.bf16.vlgmr.msra.gmra.mxu2 %vm386_vm1, %v1370_v16  ;;  %1228 = vmatmul.msk.bf16.vlgmr.msra.gmra.mxu3 %vm386_vm1, %v1372_v17 }
  0x41   : > { %972 = vmatpush.bf16.msrb.mxu0 %v1381_v22  ;;  %991 = vmatpush.bf16.msrb.mxu1 %v1389_v23 }
  0x42   : > { %1010 = vmatpush.bf16.msrb.mxu2 %v1397_v26  ;;  %1029 = vmatpush.bf16.msrb.mxu3 %v1405_v27  ;;  %v1390_v27 = vld [vmem:[%s2022_s3 + $0x80] sm:$0xff] }
  0x45   : > { %973 = vmatpush.bf16.msrb.mxu0 %v1380_v24  ;;  %992 = vmatpush.bf16.msrb.mxu1 %v1388_v25 }
  0x46   : > { %1011 = vmatpush.bf16.msrb.mxu2 %v1396_v30  ;;  %1030 = vmatpush.bf16.msrb.mxu3 %v1404_v31 }
  0x49   : > { %974 = vmatpush.bf16.msrb.mxu0 %v1379_v28  ;;  %993 = vmatpush.bf16.msrb.mxu1 %v1387_v29  ;;  %v1398_v28 = vld [vmem:[%s2022_s3 + $0xc0] sm:$0xff] }
  0x4a   : > { %1012 = vmatpush.bf16.msrb.mxu2 %v1395_v34  ;;  %1031 = vmatpush.bf16.msrb.mxu3 %v1403_v35 }
  0x4d   : > { %975 = vmatpush.bf16.msrb.mxu0 %v1378_v32  ;;  %994 = vmatpush.bf16.msrb.mxu1 %v1386_v33 }
  0x4e   : > { %1013 = vmatpush.bf16.msrb.mxu2 %v1394_v41  ;;  %1032 = vmatpush.bf16.msrb.mxu3 %v1402_v42 }
  0x4f   : > { %1187 = vmatmul.msk.bf16.gmra.mxu0 %vm386_vm1, %v1367_v18  ;;  %1201 = vmatmul.msk.bf16.gmra.mxu1 %vm386_vm1, %v1369_v19 }
  0x50   : > { %1215 = vmatmul.msk.bf16.gmra.mxu2 %vm386_vm1, %v1371_v20  ;;  %1229 = vmatmul.msk.bf16.gmra.mxu3 %vm386_vm1, %v1373_v21 }
  0x51   : > { %976 = vmatpush.bf16.msrb.mxu0 %v1377_v37  ;;  %995 = vmatpush.bf16.msrb.mxu1 %v1385_v38 }
  0x52   : > { %1014 = vmatpush.bf16.msrb.mxu2 %v1393_v49  ;;  %1033 = vmatpush.bf16.msrb.mxu3 %v1401_v50 }
  0x55   : > { %977 = vmatpush.bf16.msrb.mxu0 %v1376_v45  ;;  %996 = vmatpush.bf16.msrb.mxu1 %v1384_v46 }
  0x56   : > { %1015 = vmatpush.bf16.msrb.mxu2 %v1392_v63  ;;  %1034 = vmatpush.bf16.msrb.mxu3 %v1400_v0 }
  0x59   : > { %978 = vmatpush.bf16.msrb.mxu0 %v1375_v53  ;;  %997 = vmatpush.bf16.msrb.mxu1 %v1383_v54 }
  0x5a   : > { %1016 = vmatpush.bf16.msrb.mxu2 %v1391_v11  ;;  %1035 = vmatpush.bf16.msrb.mxu3 %v1399_v12 }
  0x5d   : > { %979 = vmatpush.bf16.msrb.mxu0 %v1374_v5  ;;  %998 = vmatpush.bf16.msrb.mxu1 %v1382_v6 }
  0x5e   : > { %1017 = vmatpush.bf16.msrb.mxu2 %v1390_v27  ;;  %1036 = vmatpush.bf16.msrb.mxu3 %v1398_v28 }
  0xbc   : > { %v406_v39 = vpop.f32.mrf.mxu0  ;;  %v478_v40 = vpop.f32.mrf.mxu1 }
  0xbd   : > { %v1850_v43 = vadd.f32 %v1835_v36, %v406_v39  ;;  %v1853_v44 = vadd.f32 %v1835_v36, %v478_v40 }
  0xbf   : > { %v416_v47 = vmax.f32 %v1850_v43, -30.0  ;;  %v488_v48 = vmax.f32 %v1853_v44, -30.0 }
  0xc1   : > { %v420_v51 = vsub.f32 0.0, %v416_v47  ;;  %v492_v52 = vsub.f32 0.0, %v488_v48 }
  0xc3   : > { %v424_v55 = vmul.f32 1.442695, %v420_v51  ;;  %v496_v56 = vmul.f32 1.442695, %v492_v52  ;;  %v550_v57 = vpop.f32.mrf.mxu2  ;;  %v622_v58 = vpop.f32.mrf.mxu3 }
  0xc4   : > { %v1876_v59 = vadd.f32 %v1835_v36, %v550_v57  ;;  %v1879_v60 = vadd.f32 %v1835_v36, %v622_v58  ;;  %v408_v61 = vpop.f32.mrf.mxu0  ;;  %v480_v62 = vpop.f32.mrf.mxu1 }
  0xc5   : > { %1492 = vpow2.f32 %v424_v55  ;;  %v1888_v1 = vadd.f32 %v1835_v36, %v408_v61  ;;  %v1891_v2 = vadd.f32 %v1835_v36, %v480_v62 }
  0xc6   : > { %1494 = vpow2.f32 %v496_v56  ;;  %v560_v3 = vmax.f32 %v1876_v59, -30.0  ;;  %v632_v4 = vmax.f32 %v1879_v60, -30.0 }
  0xc7   : > { %v417_v7 = vmax.f32 %v1888_v1, -30.0  ;;  %v489_v8 = vmax.f32 %v1891_v2, -30.0 }
  0xc8   : > { %v564_v9 = vsub.f32 0.0, %v560_v3  ;;  %v636_v10 = vsub.f32 0.0, %v632_v4 }
  0xc9   : > { %v421_v13 = vsub.f32 0.0, %v417_v7  ;;  %v493_v14 = vsub.f32 0.0, %v489_v8 }
  0xca   : > { %v568_v15 = vmul.f32 1.442695, %v564_v9  ;;  %v640_v16 = vmul.f32 1.442695, %v636_v10 }
  0xcb   : > { %v1493_v17 = vpop.eup %1492  ;;  %v426_v18 = vmul.f32 1.442695, %v421_v13  ;;  %v552_v19 = vpop.f32.mrf.mxu2  ;;  %v498_v29 = vmul.f32 1.442695, %v493_v14 }
  0xcc   : > { %v624_v20 = vpop.f32.mrf.mxu3  ;;  %v1495_v21 = vpop.eup %1494  ;;  %v432_v22 = vadd.f32 1.0, %v1493_v17  ;;  %1496 = vpow2.f32 %v568_v15  ;;  %v1910_v23 = vadd.f32 %v1835_v36, %v552_v19 }
  0xcd   : > { %v1913_v24 = vadd.f32 %v1835_v36, %v624_v20  ;;  %v411_v25 = vpop.f32.mrf.mxu0  ;;  %v483_v26 = vpop.f32.mrf.mxu1  ;;  %1498 = vpow2.f32 %v640_v16  ;;  %v504_v32 = vadd.f32 1.0, %v1495_v21 }
  0xce   : > { %v1922_v30 = vadd.f32 %v1835_v36, %v411_v25  ;;  %v1925_v31 = vadd.f32 %v1835_v36, %v483_v26  ;;  %v561_v33 = vmax.f32 %v1910_v23, -30.0  ;;  %1500 = vrcp.f32 %v432_v22 }
  0xcf   : > { %v633_v34 = vmax.f32 %v1913_v24, -30.0  ;;  %1502 = vpow2.f32 %v426_v18 }
  0xd0   : > { %v418_v35 = vmax.f32 %v1922_v30, -30.0  ;;  %v490_v37 = vmax.f32 %v1925_v31, -30.0  ;;  %v565_v38 = vsub.f32 0.0, %v561_v33  ;;  %1504 = vpow2.f32 %v498_v29 }
  0xd1   : > { %v637_v39 = vsub.f32 0.0, %v633_v34  ;;  %1506 = vrcp.f32 %v504_v32 }
  0xd2   : > { %v422_v40 = vsub.f32 0.0, %v418_v35  ;;  %v1497_v41 = vpop.eup %1496  ;;  %v570_v42 = vmul.f32 1.442695, %v565_v38  ;;  %v494_v49 = vsub.f32 0.0, %v490_v37 }
  0xd3   : > { %v1499_v45 = vpop.eup %1498  ;;  %v576_v46 = vadd.f32 1.0, %v1497_v41  ;;  %v642_v47 = vmul.f32 1.442695, %v637_v39  ;;  %v555_v50 = vpop.f32.mrf.mxu2 }
  0xd4   : > { %v428_v48 = vmul.f32 1.442695, %v422_v40  ;;  %v627_v51 = vpop.f32.mrf.mxu3  ;;  %v648_v52 = vadd.f32 1.0, %v1499_v45  ;;  %1508 = vpow2.f32 %v570_v42  ;;  %v1932_v53 = vadd.f32 %v1835_v36, %v555_v50  ;;  %v1501_v57 = vpop.eup %1500 }
  0xd5   : > { %v1935_v54 = vadd.f32 %v1835_v36, %v627_v51  ;;  %v413_v55 = vpop.f32.mrf.mxu0  ;;  %v485_v56 = vpop.f32.mrf.mxu1  ;;  %1510 = vrcp.f32 %v576_v46  ;;  %v500_v5 = vmul.f32 1.442695, %v494_v49  ;;  %v440_v13 = vmul.f32 %v1501_v57, %v1850_v43 }
  0xd6   : > { %v1938_v58 = vadd.f32 %v1835_v36, %v413_v55  ;;  %v1503_v61 = vpop.eup %1502  ;;  %1512 = vrcp.f32 %v648_v52  ;;  %v562_v62 = vmax.f32 %v1932_v53, -30.0  ;;  %v1943_v0 = vadd.f32 %v1835_v36, %v485_v56 }
  0xd7   : > { %v634_v63 = vmax.f32 %v1935_v54, -30.0  ;;  %v1505_v3 = vpop.eup %1504  ;;  %v433_v4 = vadd.f32 1.0, %v1503_v61  ;;  %1514 = vpow2.f32 %v642_v47  ;;  %v444_v35 = vpack.c.bf16 %v440_v13, %v440_v13 }
  0xd8   : > { %v419_v6 = vmax.f32 %v1938_v58, -30.0  ;;  %v1507_v7 = vpop.eup %1506  ;;  %v505_v8 = vadd.f32 1.0, %v1505_v3  ;;  %1516 = vpow2.f32 %v428_v48  ;;  %v566_v9 = vsub.f32 0.0, %v562_v62 }
  0xd9   : > { %1518 = vrcp.f32 %v433_v4  ;;  %v638_v10 = vsub.f32 0.0, %v634_v63  ;;  %v491_v15 = vmax.f32 %v1943_v0, -30.0  ;;  %v512_v43 = vmul.f32 %v1507_v7, %v1853_v44 }
  0xda   : > { %v423_v11 = vsub.f32 0.0, %v419_v6  ;;  %v1509_v12 = vpop.eup %1508  ;;  %1520 = vrcp.f32 %v505_v8  ;;  %v572_v14 = vmul.f32 1.442695, %v566_v9  ;;  %v668_v57 = vunpack.c.l.b16 %v444_v35 }
  0xdb   : > { %v1511_v16 = vpop.eup %1510  ;;  %v577_v17 = vadd.f32 1.0, %v1509_v12  ;;  %1522 = vpow2.f32 %v500_v5  ;;  %v644_v18 = vmul.f32 1.442695, %v638_v10  ;;  %v557_v20 = vpop.f32.mrf.mxu2  ;;  %v495_v25 = vsub.f32 0.0, %v491_v15 }
  0xdc   : > { %v430_v19 = vmul.f32 1.442695, %v423_v11  ;;  %v629_v21 = vpop.f32.mrf.mxu3  ;;  %v1513_v22 = vpop.eup %1512  ;;  %1524 = vpow2.f32 %v572_v14  ;;  %v1949_v26 = vadd.f32 %v1835_v36, %v557_v20  ;;  %v584_v40 = vmul.f32 %v1511_v16, %v1876_v59 }
  0xdd   : > { %v1515_v27 = vpop.eup %1514  ;;  %1526 = vrcp.f32 %v577_v17  ;;  %v1953_v28 = vadd.f32 %v1835_v36, %v629_v21  ;;  %v502_v33 = vmul.f32 1.442695, %v495_v25  ;;  %v516_v42 = vpack.c.bf16 %v512_v43, %v512_v43 }
  0xde   : > { %v1517_v29 = vpop.eup %1516  ;;  %v649_v32 = vadd.f32 1.0, %v1515_v27  ;;  %1528 = vpow2.f32 %v644_v18  ;;  %v563_v38 = vmax.f32 %v1949_v26, -30.0  ;;  %v656_v52 = vmul.f32 %v1513_v22, %v1879_v60 }
  0xdf   : > { %v1519_v34 = vpop.eup %1518  ;;  %v434_v37 = vadd.f32 1.0, %v1517_v29  ;;  %1530 = vpow2.f32 %v430_v19  ;;  %v635_v44 = vmax.f32 %v1953_v28, -30.0  ;;  %v588_v61 = vpack.c.bf16 %v584_v40, %v584_v40 }
  0xe0   : > { %v1521_v39 = vpop.eup %1520  ;;  %v441_v41 = vmul.f32 %v1519_v34, %v1888_v1  ;;  %1532 = vrcp.f32 %v649_v32  ;;  %v567_v46 = vsub.f32 0.0, %v563_v38  ;;  %v680_v3 = vunpack.c.l.b16 %v516_v42 }
  0xe1   : > { %v1523_v36 = vpop.eup %1522  ;;  %v513_v45 = vmul.f32 %v1521_v39, %v1891_v2  ;;  %1534 = vrcp.f32 %v434_v37  ;;  %v639_v50 = vsub.f32 0.0, %v635_v44  ;;  %v660_v10 = vpack.c.bf16 %v656_v52, %v656_v52 }
  0xe2   : > { %v1525_v47 = vpop.eup %1524  ;;  %v445_v48 = vpack.c.bf16 %v441_v41, %v441_v41  ;;  %v506_v49 = vadd.f32 1.0, %v1523_v36  ;;  %1536 = vpow2.f32 %v502_v33  ;;  %v574_v1 = vmul.f32 1.442695, %v567_v46 }
  0xe3   : > { %v1527_v51 = vpop.eup %1526  ;;  %v517_v59 = vpack.c.bf16 %v513_v45, %v513_v45  ;;  %v578_v55 = vadd.f32 1.0, %v1525_v47  ;;  %v646_v5 = vmul.f32 1.442695, %v639_v50  ;;  %v692_v14 = vunpack.c.l.b16 %v588_v61 }
  0xe4   : > { %v1529_v56 = vpop.eup %1528  ;;  %v669_v62 = vunpack.c.l.b16 %v445_v48  ;;  %v585_v63 = vmul.f32 %v1527_v51, %v1910_v23  ;;  %1538 = vrcp.f32 %v506_v49  ;;  %v704_v20 = vunpack.c.l.b16 %v660_v10 }
  0xe5   : > { %v1531_v2 = vpop.eup %1530  ;;  %v681_v4 = vunpack.c.l.b16 %v517_v59  ;;  %1540 = vpow2.f32 %v574_v1  ;;  %v650_v23 = vadd.f32 1.0, %v1529_v56 }
  0xe6   : > { %v1533_v6 = vpop.eup %1532  ;;  %v589_v7 = vpack.c.bf16 %v585_v63, %v585_v63  ;;  %v435_v8 = vadd.f32 1.0, %v1531_v2  ;;  %v672_v9 = vpack.c.b16 %v669_v62, %v668_v57  ;;  %1542 = vrcp.f32 %v578_v55  ;;  %v1491_v2 = vld [vmem:[%s2023_s4] ss:$0 sm:$0xff] }
  0xe7   : > { %v1535_v60 = vpop.eup %1534  ;;  %v657_v11 = vmul.f32 %v1533_v6, %v1913_v24  ;;  %v684_v12 = vpack.c.b16 %v681_v4, %v680_v3 }
  0xe8   : > { %v1537_v13 = vpop.eup %1536  ;;  %v693_v15 = vunpack.c.l.b16 %v589_v7  ;;  %1544 = vrcp.f32 %v435_v8  ;;  %980 = vmatmul.bf16.vlgmr.msrb.gmra.mxu0 %v672_v9  ;;  %v442_v22 = vmul.f32 %v1535_v60, %v1922_v30 }
  0xe9   : > { %v661_v16 = vpack.c.bf16 %v657_v11, %v657_v11  ;;  %v507_v17 = vadd.f32 1.0, %v1537_v13  ;;  %1546 = vpow2.f32 %v646_v5  ;;  %999 = vmatmul.bf16.vlgmr.msrb.gmra.mxu1 %v684_v12 }
  0xea   : > { %v696_v18 = vpack.c.b16 %v693_v15, %v692_v14  ;;  %v1539_v19 = vpop.eup %1538  ;;  %v446_v34 = vpack.c.bf16 %v442_v22, %v442_v22 }
  0xeb   : > { %v705_v21 = vunpack.c.l.b16 %v661_v16  ;;  %1548 = vrcp.f32 %v507_v17  ;;  %v1541_v24 = vpop.eup %1540  ;;  %v514_v32 = vmul.f32 %v1539_v19, %v1925_v31 }
  0xec   : > { %1550 = vrcp.f32 %v650_v23  ;;  %1018 = vmatmul.bf16.vlgmr.msrb.gmra.mxu2 %v696_v18  ;;  %v1543_v25 = vpop.eup %1542  ;;  %v579_v27 = vadd.f32 1.0, %v1541_v24  ;;  %v670_v36 = vunpack.c.l.b16 %v446_v34 }
  0xed   : > { %v708_v43 = vpack.c.b16 %v705_v21, %v704_v20  ;;  %v518_v40 = vpack.c.bf16 %v514_v32, %v514_v32  ;;  %v586_v41 = vmul.f32 %v1543_v25, %v1932_v53 }
  0xee   : > { %v1545_v29 = vpop.eup %1544  ;;  %1552 = vrcp.f32 %v579_v27 }
  0xef   : > { %v1547_v33 = vpop.eup %1546  ;;  %v443_v35 = vmul.f32 %v1545_v29, %v1938_v58  ;;  %1037 = vmatmul.bf16.vlgmr.msrb.gmra.mxu3 %v708_v43  ;;  %v590_v58 = vpack.c.bf16 %v586_v41, %v586_v41  ;;  %v682_v49 = vunpack.c.l.b16 %v518_v40 }
  0xf0   : > { %v651_v37 = vadd.f32 1.0, %v1547_v33 }
  0xf1   : > { %v1549_v38 = vpop.eup %1548  ;;  %v447_v39 = vpack.c.bf16 %v443_v35, %v443_v35  ;;  %v694_v55 = vunpack.c.l.b16 %v590_v58 }
  0xf2   : > { %v1551_v30 = vpop.eup %1550  ;;  %v515_v44 = vmul.f32 %v1549_v38, %v1943_v0  ;;  %1554 = vrcp.f32 %v651_v37 }
  0xf3   : > { %v671_v42 = vunpack.c.l.b16 %v447_v39  ;;  %v658_v46 = vmul.f32 %v1551_v30, %v1935_v54 }
  0xf4   : > { %v519_v45 = vpack.c.bf16 %v515_v44, %v515_v44  ;;  %v1553_v31 = vpop.eup %1552 }
  0xf5   : > { %v673_v47 = vpack.c.b16 %v671_v42, %v670_v36  ;;  %v587_v48 = vmul.f32 %v1553_v31, %v1949_v26  ;;  %v662_v53 = vpack.c.bf16 %v658_v46, %v658_v46 }
  0xf6   : > { %v683_v50 = vunpack.c.l.b16 %v519_v45 }
  0xf7   : > { %v591_v52 = vpack.c.bf16 %v587_v48, %v587_v48  ;;  %v706_v61 = vunpack.c.l.b16 %v662_v53 }
  0xf8   : > { %v1555_v51 = vpop.eup %1554  ;;  %985 = vmatmul.bf16.gmra.mxu0 %v673_v47  ;;  %v685_v59 = vpack.c.b16 %v683_v50, %v682_v49 }
  0xf9   : > { %v659_v0 = vmul.f32 %v1555_v51, %v1953_v28  ;;  %v695_v1 = vunpack.c.l.b16 %v591_v52 }
  0xfa   : > { %1004 = vmatmul.bf16.gmra.mxu1 %v685_v59 }
  0xfb   : > { %v663_v56 = vpack.c.bf16 %v659_v0, %v659_v0  ;;  %v697_v57 = vpack.c.b16 %v695_v1, %v694_v55 }
  0xfd   : > { %v707_v54 = vunpack.c.l.b16 %v663_v56  ;;  %1023 = vmatmul.bf16.gmra.mxu2 %v697_v57 }
  0xff   : > { %v709_v62 = vpack.c.b16 %v707_v54, %v706_v61 }
 0x101   : > { %1042 = vmatmul.bf16.gmra.mxu3 %v709_v62 }
 0x165   : > { %v981_v26 = vpop.f32.mrf.mxu0 }
 0x166   : > { %v1000_v63 = vpop.f32.mrf.mxu1  ;;  %v982_v28 = vadd.f32 %v1491_v2, %v981_v26 }
 0x168   : > { %v1001_v8 = vadd.f32 %v1000_v63, %v982_v28 }
 0x16d   : > { %v983_v3 = vpop.f32.mrf.mxu0 }
 0x16e   : > { %v984_v5 = vadd.f32 %v1491_v2, %v983_v3  ;;  %v1002_v7 = vpop.f32.mrf.mxu1 }
 0x16f   : > { %v1019_v4 = vpop.f32.mrf.mxu2 }
 0x170   : > { %v1003_v9 = vadd.f32 %v1002_v7, %v984_v5  ;;  %v1020_v60 = vadd.f32 %v1019_v4, %v1001_v8 }
 0x172   : > { %v1038_v6 = vpop.f32.mrf.mxu3 }
 0x173   : > { %v1039_v14 = vadd.f32 %v1038_v6, %v1020_v60 }
 0x175   : > { %v986_v10 = vpop.f32.mrf.mxu0 }
 0x176   : > { %v987_v19 = vadd.f32 %v1491_v2, %v986_v10 }
 0x177   : > { %v1021_v11 = vpop.f32.mrf.mxu2  ;;  %v1005_v23 = vpop.f32.mrf.mxu1 }
 0x178   : > { %v1022_v12 = vadd.f32 %v1021_v11, %v1003_v9  ;;  %v1006_v22 = vadd.f32 %v1005_v23, %v987_v19 }
 0x17a   : > { %v1040_v13 = vpop.f32.mrf.mxu3 }
 0x17b   : > { %v1041_v15 = vadd.f32 %v1040_v13, %v1022_v12 }
 0x17d   : > { %v1409_v16 = vpack.c.bf16 %v1041_v15, %v1039_v14  ;;  %v988_v17 = vpop.f32.mrf.mxu0 }
 0x17e   : > { %v989_v20 = vadd.f32 %v1491_v2, %v988_v17 }
 0x17f   : > { %1410 = vst [vmem:[%s344_s6] sm:$0xff] %v1409_v16   ;;  %v1007_v24 = vpop.f32.mrf.mxu1 }
 0x180   : > { %v1024_v18 = vpop.f32.mrf.mxu2  ;;  %v1008_v25 = vadd.f32 %v1007_v24, %v989_v20 }
 0x181   : > { %v1025_v27 = vadd.f32 %v1024_v18, %v1006_v22 }
 0x184   : > { %v1043_v21 = vpop.f32.mrf.mxu3 }
 0x185   : > { %v1044_v33 = vadd.f32 %v1043_v21, %v1025_v27 }
 0x188   : > { %v1026_v43 = vpop.f32.mrf.mxu2 }
 0x189   : > { %v1027_v29 = vadd.f32 %v1026_v43, %v1008_v25 }
 0x18c   : > { %v1045_v32 = vpop.f32.mrf.mxu3 }
 0x18d   : > { %v1046_v34 = vadd.f32 %v1045_v32, %v1027_v29 }
 0x18f   : > { %v1414_v35 = vpack.c.bf16 %v1046_v34, %v1044_v33 }
 0x191   : > { %1416 = vst [vmem:[%s344_s6 + $0x8] sm:$0xff] %v1414_v35  }
 0x192   : > { %1583 = shalt.err (!%p1580_p7)
}
 0x193   : > { %s1652_s13 = smov 64   ;;  %s1653_s6 = smov 4  }
 0x194   : > { %1417 = dma.vmem_to_hbm [thread:$0]  (%p1744_p8), %s1072_s21, 256, %s1074_s22, %s1057_s30, %s1652_s13, %s1652_s13, %s1653_s6  }
 0x195 PF: > { %p1423_p10 = scmp.ge.s32.totalorder %s1650_s25, 2  ;;  %s1088_s26 = sand.u32 1, %s1622_s18  }
 0x196   : > { %s1089_s27 = scalar_lea.sflag [#allocation4], %s1088_s26 }
 0x197   : > { %p1420_p11 = pnand %p1423_p10, %p1748_p9 }
 0x199   : > { %p1421_p12 = pneg %p1420_p11 }
 0x19b   : > { %1617 = dma.done.wait (%p1421_p12), %s1089_s27, 256  }
 0x19c   : > { %1619 = vsyncadd (%p1421_p12), %s1089_s27, 4294967040  ;;  %s18_s25 = sadd.s32 1, %s1650_s25   ;;  %s2028_s18 = smov %s1626_s19 }
 0x19d   : > { %p15_p13 = scmp.ge.s32.totalorder %s18_s25, 6   ;;  %s2029_s19 = smov %s1630_s20 }
 0x19e   : > { %s2030_s20 = smov %s1756_s12  ;;  %s2031_s21 = smov %s1642_s23 }
 0x19f   : > { %s2032_s22 = smov %s1646_s24  ;;  %s2033_s23 = smov %s2036_s28 }
 0x1a0   : > { %s2034_s24 = smov %s2040_s29  ;;  %17 = sbr.rel (!%p15_p13) target bundleno = 5 (0x5), region = 124 }
 0x1a5   :  { %1095 = vsyncpa [#allocation4], 1 }
 0x1a6   :  { %1097 = vsyncpa [#allocation4 + $0x1], 1 }

</bundles_post_ra>
